<compile_context>
chip_gen: v7x
topology: tpu7x:2x2x1
jax: 0.10.0
libtpu: 0.0.40
codegen_flags: <defaults>
</compile_context>

<pallas_src>
import jax
import jax.numpy as jnp
from jax.experimental import pallas as pl
from jax.experimental.pallas import tpu as pltpu


def _make_kernel(has_mask, compute_dtype):
    # approx reciprocal (EUP) only on the bf16 fast path; exact divide on f32.
    approx_recip = (compute_dtype == jnp.bfloat16)

    def kernel(*refs):
        if has_mask:
            (q_ref, k_ref, v_ref, mask_ref,
             wq_ref, bq_ref, wk_ref, bk_ref, wv_ref, bv_ref,
             out_ref, attn_ref, k_scr, v_scr) = refs
        else:
            (q_ref, k_ref, v_ref,
             wq_ref, bq_ref, wk_ref, bk_ref, wv_ref, bv_ref,
             out_ref, attn_ref, k_scr, v_scr) = refs
            mask_ref = None

        bb, tq, E = q_ref.shape
        Lk = k_ref.shape[1]

        # ---- K/V projection hoist: once per batch block (first q tile only),
        # cached in VMEM scratch and reused by every q tile of this block. ----
        @pl.when(pl.program_id(1) == 0)
        def _():
            k2 = k_ref[...].reshape(bb * Lk, E).astype(compute_dtype)
            v2 = v_ref[...].reshape(bb * Lk, E).astype(compute_dtype)
            K = (jnp.dot(k2, wk_ref[...], preferred_element_type=jnp.float32)
                 + bk_ref[...])
            V = (jnp.dot(v2, wv_ref[...], preferred_element_type=jnp.float32)
                 + bv_ref[...])
            k_scr[...] = K.reshape(bb, Lk, E).astype(k_scr.dtype)
            v_scr[...] = V.reshape(bb, Lk, E).astype(v_scr.dtype)

        # ---- Q projection (1/scale already folded into wq/bq by the wrapper).
        q2 = q_ref[...].reshape(bb * tq, E).astype(compute_dtype)
        Q = (jnp.dot(q2, wq_ref[...], preferred_element_type=jnp.float32)
             + bq_ref[...]).reshape(bb, tq, E)

        # ---- scores: contract embed dim of Q and cached K (no K.T built). ---
        scores = jnp.einsum("bqe,bke->bqk",
                            Q.astype(compute_dtype), k_scr[...],
                            preferred_element_type=jnp.float32)

        if mask_ref is not None:
            # masked_fill(mask == 0, -inf), matching the PyTorch module.
            scores = jnp.where(mask_ref[...] == 0, -jnp.inf, scores)

        # ---- numerically stable softmax over the key axis. ------------------
        m = jnp.max(scores, axis=-1, keepdims=True)
        e = jnp.exp(scores - m)
        denom = jnp.sum(e, axis=-1, keepdims=True)
        attn = e * pl.reciprocal(denom, approx=approx_recip)

        out = jnp.einsum("bqk,bke->bqe",
                         attn.astype(compute_dtype), v_scr[...],
                         preferred_element_type=jnp.float32)

        out_ref[...] = out.astype(out_ref.dtype)
        attn_ref[...] = attn.astype(attn_ref.dtype)

    return kernel


def _vmem_capacity_bytes():
    try:
        return int(pltpu.get_tpu_info().vmem_capacity_bytes)
    except Exception:
        return 64 << 20  # conservative default (v7x per-TC VMEM)


def _vmem_estimate(bb, tq, Lk, E, cbytes, has_mask, attn_bytes):
    """Rough per-step VMEM bytes incl. double-buffered blocks + scratch + temps."""
    in_blk = 2 * 4 * (bb * tq * E + 2 * bb * Lk * E)         # q,k,v (f32) x2 buf
    mask_blk = (2 * bb * tq * Lk) if has_mask else 0         # int8 x2 buf
    out_blk = 2 * (4 * bb * tq * E + attn_bytes * bb * tq * Lk)
    weights = 2 * (3 * E * E * cbytes + 3 * E * 4)           # weights + biases
    scratch = 2 * bb * Lk * E * cbytes                       # K/V VMEM scratch
    temps = 4 * (2 * bb * tq * E + 3 * bb * tq * Lk)         # Q/scores/exp temps
    return in_blk + mask_blk + out_blk + weights + scratch + temps


def cross_attention(query, key, value, params, mask=None,
                    compute_dtype=jnp.bfloat16, attn_dtype=jnp.float32):
    """query: (B, Lq, E); key/value: (B, Lk, E). Returns (output, attn_weights)."""
    B, Lq, E = query.shape
    _, Lk, _ = key.shape
    inv_scale = 1.0 / (float(E) ** 0.5)
    cbytes = jnp.dtype(compute_dtype).itemsize
    attn_bytes = jnp.dtype(attn_dtype).itemsize
    has_mask = mask is not None

    # nn.Linear weights arrive (out, in): transpose once to (in, out) so the
    # kernel never touches the XLU; fold 1/scale into the query projection;
    # cast weights to the MXU compute dtype once.
    wq_t = (jnp.asarray(params["wq"]).T * inv_scale).astype(compute_dtype)
    wk_t = jnp.asarray(params["wk"]).T.astype(compute_dtype)
    wv_t = jnp.asarray(params["wv"]).T.astype(compute_dtype)
    bq = (jnp.asarray(params["bq"]) * inv_scale).reshape(1, E).astype(jnp.float32)
    bk = jnp.asarray(params["bk"]).reshape(1, E).astype(jnp.float32)
    bv = jnp.asarray(params["bv"]).reshape(1, E).astype(jnp.float32)

    # ---- q tiling: whole sequence when small, else 256-row tiles (pad tail) -
    if Lq <= 512:
        tq, Lq_pad = Lq, Lq
    else:
        tq = 256
        Lq_pad = ((Lq + tq - 1) // tq) * tq

    q_in = query
    mask_arr = None
    if has_mask:
        mask_arr = jnp.broadcast_to(mask, (B, Lq, Lk)).astype(jnp.int8)
    if Lq_pad != Lq:
        q_in = jnp.pad(query, ((0, 0), (0, Lq_pad - Lq), (0, 0)))
        if has_mask:
            # Padded query rows see all keys (no NaN); they are sliced off below.
            mask_arr = jnp.pad(mask_arr, ((0, 0), (0, Lq_pad - Lq), (0, 0)),
                               constant_values=1)

    # ---- batch folding under a generation-aware VMEM budget -----------------
    vmem_cap = _vmem_capacity_bytes()
    budget = vmem_cap // 2
    # Keep >= 2 blocks along the parallel batch axis so both v7x TCs get work.
    max_bb = 1 if B == 1 else B // 2
    bb = 1
    for d in range(B, 0, -1):
        if (B % d) or d > max_bb:
            continue
        if d > 1 and (tq % 8 or Lk % 8):
            continue  # in-kernel (bb*L, E) reshape needs sublane-aligned tiles
        if _vmem_estimate(d, tq, Lk, E, cbytes, has_mask, attn_bytes) <= budget:
            bb = d
            break
    grid = (B // bb, Lq_pad // tq)

    q_spec = pl.BlockSpec((bb, tq, E), lambda bi, qi: (bi, qi, 0))
    kv_spec = pl.BlockSpec((bb, Lk, E), lambda bi, qi: (bi, 0, 0))
    w_spec = pl.BlockSpec((E, E), lambda bi, qi: (0, 0))
    b_spec = pl.BlockSpec((1, E), lambda bi, qi: (0, 0))

    in_specs = [q_spec, kv_spec, kv_spec]
    args = [q_in, key, value]
    if has_mask:
        in_specs.append(pl.BlockSpec((bb, tq, Lk), lambda bi, qi: (bi, qi, 0)))
        args.append(mask_arr)
    in_specs += [w_spec, b_spec, w_spec, b_spec, w_spec, b_spec]
    args += [wq_t, bq, wk_t, bk, wv_t, bv]

    out_shape = (
        jax.ShapeDtypeStruct((B, Lq_pad, E), query.dtype),
        jax.ShapeDtypeStruct((B, Lq_pad, Lk), attn_dtype),
    )
    out_specs = [
        pl.BlockSpec((bb, tq, E), lambda bi, qi: (bi, qi, 0)),
        pl.BlockSpec((bb, tq, Lk), lambda bi, qi: (bi, qi, 0)),
    ]
    scratch_shapes = [pltpu.VMEM((bb, Lk, E), compute_dtype),
                      pltpu.VMEM((bb, Lk, E), compute_dtype)]

    # Advisory cost so XLA can schedule around the custom call.
    cost = pl.CostEstimate(
        flops=2 * B * (Lq * E * E + 2 * Lk * E * E + 2 * Lq * Lk * E),
        transcendentals=B * Lq * Lk,
        bytes_accessed=(4 * B * (Lq + 2 * Lk) * E
                        + (B * Lq * Lk if has_mask else 0)
                        + cbytes * 3 * E * E + 4 * 3 * E
                        + 4 * B * Lq * E
                        + attn_bytes * B * Lq * Lk),
    )

    vmem_limit = int(min(vmem_cap * 3 // 4, 96 << 20))

    fn = pl.pallas_call(
        _make_kernel(has_mask, compute_dtype),
        out_shape=out_shape,
        grid_spec=pltpu.PrefetchScalarGridSpec(
            num_scalar_prefetch=0,
            grid=grid,
            in_specs=in_specs,
            out_specs=out_specs,
            scratch_shapes=scratch_shapes,
        ),
        compiler_params=pltpu.CompilerParams(
            # Batch axis parallel (megacore / 2-TC v7x); q axis arbitrary so
            # the K/V scratch hoist is valid (no core starts at qi != 0).
            dimension_semantics=("parallel", "arbitrary"),
            vmem_limit_bytes=vmem_limit,
        ),
        cost_estimate=cost,
    )
    out, attn = fn(*args)
    if Lq_pad != Lq:
        out = out[:, :Lq]
        attn = attn[:, :Lq]
    return out, attn


def _reference(query, key, value, params, mask=None):
    E = query.shape[-1]
    scale = float(E) ** 0.5
    hp = jax.lax.Precision.HIGHEST
    Q = jnp.einsum("ble,oe->blo", query, params["wq"], precision=hp) + params["bq"]
    K = jnp.einsum("ble,oe->blo", key, params["wk"], precision=hp) + params["bk"]
    V = jnp.einsum("ble,oe->blo", value, params["wv"], precision=hp) + params["bv"]
    scores = jnp.einsum("bqe,bke->bqk", Q, K, precision=hp) / scale
    if mask is not None:
        scores = jnp.where(mask == 0, -jnp.inf, scores)
    attn = jax.nn.softmax(scores, axis=-1)
    out = jnp.einsum("bqk,bke->bqe", attn, V, precision=hp)
    return out, attn


if __name__ == "__main__":
    B, Lq, Lk, E = 2, 8, 8, 32

    key0 = jax.random.PRNGKey(0)
    ks = jax.random.split(key0, 10)

    # PyTorch nn.Linear layout: W is (out, in).
    bound = 1.0 / (E ** 0.5)
    params = {
        "wq": jax.random.uniform(ks[0], (E, E), jnp.float32, -bound, bound),
        "bq": jax.random.uniform(ks[1], (E,), jnp.float32, -bound, bound),
        "wk": jax.random.uniform(ks[2], (E, E), jnp.float32, -bound, bound),
        "bk": jax.random.uniform(ks[3], (E,), jnp.float32, -bound, bound),
        "wv": jax.random.uniform(ks[4], (E, E), jnp.float32, -bound, bound),
        "bv": jax.random.uniform(ks[5], (E,), jnp.float32, -bound, bound),
    }

    query = jax.random.normal(ks[6], (B, Lq, E), jnp.float32)
    key_t = jax.random.normal(ks[7], (B, Lk, E), jnp.float32)
    value = jax.random.normal(ks[8], (B, Lk, E), jnp.float32)

    ref_out, ref_attn = _reference(query, key_t, value, params)

    # --- f32 compute path: near-exact parity with the reference -------------
    out_f32, attn_f32 = cross_attention(query, key_t, value, params,
                                        compute_dtype=jnp.float32)
    jax.block_until_ready((out_f32, attn_f32))
    assert jnp.allclose(out_f32, ref_out, atol=5e-3, rtol=5e-3), "f32 output mismatch"
    assert jnp.allclose(attn_f32, ref_attn, atol=5e-3, rtol=5e-3), "f32 attn mismatch"

    # --- bf16 MXU fast path (default): relaxed tolerance ---------------------
    out_bf, attn_bf = cross_attention(query, key_t, value, params)
    jax.block_until_ready((out_bf, attn_bf))
    assert jnp.allclose(out_bf, ref_out, atol=3e-2, rtol=3e-2), "bf16 output mismatch"
    assert jnp.allclose(attn_bf, ref_attn, atol=3e-2, rtol=3e-2), "bf16 attn mismatch"

    # --- masked path (mask == 0 -> -inf); each row keeps >= 1 visible key ----
    mask = (jax.random.uniform(ks[9], (B, Lq, Lk)) > 0.3)
    mask = mask.at[:, :, 0].set(True)
    out_m, attn_m = cross_attention(query, key_t, value, params, mask=mask,
                                    compute_dtype=jnp.float32)
    jax.block_until_ready((out_m, attn_m))
    ref_out_m, ref_attn_m = _reference(query, key_t, value, params, mask=mask)
    assert jnp.allclose(out_m, ref_out_m, atol=5e-3, rtol=5e-3), "masked output mismatch"
    assert jnp.allclose(attn_m, ref_attn_m, atol=5e-3, rtol=5e-3), "masked attn mismatch"

    print("KERNEL_OK")
</pallas_src>

<mosaic_0001>
module attributes {stable_mosaic.version = 11 : i64} {
  func.func @kernel(%arg0: i32, %arg1: i32, %arg2: memref<1x8x32xf32, #tpu.memory_space<vmem>>, %arg3: memref<1x8x32xf32, #tpu.memory_space<vmem>>, %arg4: memref<1x8x32xf32, #tpu.memory_space<vmem>>, %arg5: memref<32x32xf32, #tpu.memory_space<vmem>>, %arg6: memref<1x32xf32, #tpu.memory_space<vmem>>, %arg7: memref<32x32xf32, #tpu.memory_space<vmem>>, %arg8: memref<1x32xf32, #tpu.memory_space<vmem>>, %arg9: memref<32x32xf32, #tpu.memory_space<vmem>>, %arg10: memref<1x32xf32, #tpu.memory_space<vmem>>, %arg11: memref<1x8x32xf32, #tpu.memory_space<vmem>>, %arg12: memref<1x8x8xf32, #tpu.memory_space<vmem>>, %arg13: memref<1x8x32xf32, #tpu.memory_space<vmem>>, %arg14: memref<1x8x32xf32, #tpu.memory_space<vmem>>) attributes {dimension_semantics = [#tpu.dimension_semantics<parallel>, #tpu.dimension_semantics<arbitrary>], iteration_bounds = array<i64: 2, 1>, scalar_prefetch = 0 : i64, scratch_operands = 2 : i64, tpu.core_type = #tpu.core_type<tc>, window_params = [{transform_indices = @transform_0, window_bounds = array<i64: 1, 8, 32>}, {transform_indices = @transform_1, window_bounds = array<i64: 1, 8, 32>}, {transform_indices = @transform_2, window_bounds = array<i64: 1, 8, 32>}, {pipeline_mode = #tpu.pipeline_mode<synchronous>, transform_indices = @transform_3, window_bounds = array<i64: 32, 32>}, {pipeline_mode = #tpu.pipeline_mode<synchronous>, transform_indices = @transform_4, window_bounds = array<i64: 1, 32>}, {pipeline_mode = #tpu.pipeline_mode<synchronous>, transform_indices = @transform_5, window_bounds = array<i64: 32, 32>}, {pipeline_mode = #tpu.pipeline_mode<synchronous>, transform_indices = @transform_6, window_bounds = array<i64: 1, 32>}, {pipeline_mode = #tpu.pipeline_mode<synchronous>, transform_indices = @transform_7, window_bounds = array<i64: 32, 32>}, {pipeline_mode = #tpu.pipeline_mode<synchronous>, transform_indices = @transform_8, window_bounds = array<i64: 1, 32>}, {transform_indices = @transform_9, window_bounds = array<i64: 1, 8, 32>}, {transform_indices = @transform_10, window_bounds = array<i64: 1, 8, 8>}]} {
    %c0_i32 = arith.constant 0 : i32
    %0 = arith.cmpi eq, %arg1, %c0_i32 : i32
    %1 = arith.extui %0 : i1 to i32
    %c0_i32_0 = arith.constant 0 : i32
    %2 = arith.cmpi ne, %1, %c0_i32_0 : i32
    scf.if %2 {
      %c0_23 = arith.constant 0 : index
      %c0_24 = arith.constant 0 : index
      %c0_25 = arith.constant 0 : index
      %27 = vector.load %arg3[%c0_23, %c0_24, %c0_25] : memref<1x8x32xf32, #tpu.memory_space<vmem>>, vector<1x8x32xf32>
      %28 = vector.shape_cast %27 : vector<1x8x32xf32> to vector<8x32xf32>
      %c0_26 = arith.constant 0 : index
      %c0_27 = arith.constant 0 : index
      %c0_28 = arith.constant 0 : index
      %29 = vector.load %arg4[%c0_26, %c0_27, %c0_28] : memref<1x8x32xf32, #tpu.memory_space<vmem>>, vector<1x8x32xf32>
      %30 = vector.shape_cast %29 : vector<1x8x32xf32> to vector<8x32xf32>
      %c0_29 = arith.constant 0 : index
      %c0_30 = arith.constant 0 : index
      %31 = vector.load %arg7[%c0_29, %c0_30] : memref<32x32xf32, #tpu.memory_space<vmem>>, vector<32x32xf32>
      %cst_31 = arith.constant dense<0.000000e+00> : vector<8x32xf32>
      %32 = tpu.matmul %28, %31, %cst_31 {dimension_numbers = #tpu.dot_dimension_numbers<[1], [0], [0], [1], [0, 0, 1, 1], [], []>} : vector<8x32xf32>, vector<32x32xf32>, vector<8x32xf32> -> vector<8x32xf32>
      %c0_32 = arith.constant 0 : index
      %c0_33 = arith.constant 0 : index
      %33 = vector.load %arg8[%c0_32, %c0_33] : memref<1x32xf32, #tpu.memory_space<vmem>>, vector<1x32xf32>
      %34 = vector.broadcast %33 : vector<1x32xf32> to vector<8x32xf32>
      %35 = arith.addf %32, %34 : vector<8x32xf32>
      %c0_34 = arith.constant 0 : index
      %c0_35 = arith.constant 0 : index
      %36 = vector.load %arg9[%c0_34, %c0_35] : memref<32x32xf32, #tpu.memory_space<vmem>>, vector<32x32xf32>
      %cst_36 = arith.constant dense<0.000000e+00> : vector<8x32xf32>
      %37 = tpu.matmul %30, %36, %cst_36 {dimension_numbers = #tpu.dot_dimension_numbers<[1], [0], [0], [1], [0, 0, 1, 1], [], []>} : vector<8x32xf32>, vector<32x32xf32>, vector<8x32xf32> -> vector<8x32xf32>
      %c0_37 = arith.constant 0 : index
      %c0_38 = arith.constant 0 : index
      %38 = vector.load %arg10[%c0_37, %c0_38] : memref<1x32xf32, #tpu.memory_space<vmem>>, vector<1x32xf32>
      %39 = vector.broadcast %38 : vector<1x32xf32> to vector<8x32xf32>
      %40 = arith.addf %37, %39 : vector<8x32xf32>
      %41 = vector.shape_cast %35 : vector<8x32xf32> to vector<1x8x32xf32>
      %c0_39 = arith.constant 0 : index
      %c0_40 = arith.constant 0 : index
      %c0_41 = arith.constant 0 : index
      %42 = vector.load %arg13[%c0_39, %c0_40, %c0_41] : memref<1x8x32xf32, #tpu.memory_space<vmem>>, vector<1x8x32xf32>
      tpu.vector_store %arg13[%c0_39, %c0_40, %c0_41], %41 {strides = array<i32>} : memref<1x8x32xf32, #tpu.memory_space<vmem>>, vector<1x8x32xf32>,
      %43 = vector.shape_cast %40 : vector<8x32xf32> to vector<1x8x32xf32>
      %c0_42 = arith.constant 0 : index
      %c0_43 = arith.constant 0 : index
      %c0_44 = arith.constant 0 : index
      %44 = vector.load %arg14[%c0_42, %c0_43, %c0_44] : memref<1x8x32xf32, #tpu.memory_space<vmem>>, vector<1x8x32xf32>
      tpu.vector_store %arg14[%c0_42, %c0_43, %c0_44], %43 {strides = array<i32>} : memref<1x8x32xf32, #tpu.memory_space<vmem>>, vector<1x8x32xf32>,
    } else {
    }
    %c0 = arith.constant 0 : index
    %c0_1 = arith.constant 0 : index
    %c0_2 = arith.constant 0 : index
    %3 = vector.load %arg2[%c0, %c0_1, %c0_2] : memref<1x8x32xf32, #tpu.memory_space<vmem>>, vector<1x8x32xf32>
    %4 = vector.shape_cast %3 : vector<1x8x32xf32> to vector<8x32xf32>
    %c0_3 = arith.constant 0 : index
    %c0_4 = arith.constant 0 : index
    %5 = vector.load %arg5[%c0_3, %c0_4] : memref<32x32xf32, #tpu.memory_space<vmem>>, vector<32x32xf32>
    %cst = arith.constant dense<0.000000e+00> : vector<8x32xf32>
    %6 = tpu.matmul %4, %5, %cst {dimension_numbers = #tpu.dot_dimension_numbers<[1], [0], [0], [1], [0, 0, 1, 1], [], []>} : vector<8x32xf32>, vector<32x32xf32>, vector<8x32xf32> -> vector<8x32xf32>
    %c0_5 = arith.constant 0 : index
    %c0_6 = arith.constant 0 : index
    %7 = vector.load %arg6[%c0_5, %c0_6] : memref<1x32xf32, #tpu.memory_space<vmem>>, vector<1x32xf32>
    %8 = vector.broadcast %7 : vector<1x32xf32> to vector<8x32xf32>
    %9 = arith.addf %6, %8 : vector<8x32xf32>
    %10 = vector.shape_cast %9 : vector<8x32xf32> to vector<1x8x32xf32>
    %c0_7 = arith.constant 0 : index
    %c0_8 = arith.constant 0 : index
    %c0_9 = arith.constant 0 : index
    %11 = vector.load %arg13[%c0_7, %c0_8, %c0_9] : memref<1x8x32xf32, #tpu.memory_space<vmem>>, vector<1x8x32xf32>
    "tpu.trace_start"() <{level = 10 : i32, message = "bqe,bke->bqk"}> : () -> ()
    %cst_10 = arith.constant dense<0.000000e+00> : vector<1x8x8xf32>
    %12 = tpu.matmul %10, %11, %cst_10 {dimension_numbers = #tpu.dot_dimension_numbers<[2], [2], [1], [1], [0, 0, 0, 1, 1, 1], [0], [0]>} : vector<1x8x32xf32>, vector<1x8x32xf32>, vector<1x8x8xf32> -> vector<1x8x8xf32>
    "tpu.trace_stop"() : () -> ()
    %cst_11 = arith.constant dense<0xFF800000> : vector<1x8xf32>
    %13 = vector.multi_reduction <maximumf>, %12, %cst_11 [2] : vector<1x8x8xf32> to vector<1x8xf32>
    %14 = vector.shape_cast %13 : vector<1x8xf32> to vector<1x8x1xf32>
    %15 = vector.broadcast %14 : vector<1x8x1xf32> to vector<1x8x8xf32>
    %16 = arith.subf %12, %15 : vector<1x8x8xf32>
    %17 = math.exp %16 : vector<1x8x8xf32>
    %cst_12 = arith.constant dense<0.000000e+00> : vector<1x8xf32>
    %18 = vector.multi_reduction <add>, %17, %cst_12 [2] : vector<1x8x8xf32> to vector<1x8xf32>
    %19 = vector.shape_cast %18 : vector<1x8xf32> to vector<1x8x1xf32>
    %20 = tpu.reciprocal %19 : vector<1x8x1xf32> -> vector<1x8x1xf32>
    %21 = vector.broadcast %20 : vector<1x8x1xf32> to vector<1x8x8xf32>
    %22 = arith.mulf %17, %21 : vector<1x8x8xf32>
    %c0_13 = arith.constant 0 : index
    %c0_14 = arith.constant 0 : index
    %c0_15 = arith.constant 0 : index
    %23 = vector.load %arg14[%c0_13, %c0_14, %c0_15] : memref<1x8x32xf32, #tpu.memory_space<vmem>>, vector<1x8x32xf32>
    "tpu.trace_start"() <{level = 10 : i32, message = "bqk,bke->bqe"}> : () -> ()
    %cst_16 = arith.constant dense<0.000000e+00> : vector<1x8x32xf32>
    %24 = tpu.matmul %22, %23, %cst_16 {dimension_numbers = #tpu.dot_dimension_numbers<[2], [1], [1], [2], [0, 0, 0, 1, 1, 2], [0], [0]>} : vector<1x8x8xf32>, vector<1x8x32xf32>, vector<1x8x32xf32> -> vector<1x8x32xf32>
    "tpu.trace_stop"() : () -> ()
    %c0_17 = arith.constant 0 : index
    %c0_18 = arith.constant 0 : index
    %c0_19 = arith.constant 0 : index
    %25 = vector.load %arg11[%c0_17, %c0_18, %c0_19] : memref<1x8x32xf32, #tpu.memory_space<vmem>>, vector<1x8x32xf32>
    tpu.vector_store %arg11[%c0_17, %c0_18, %c0_19], %24 {strides = array<i32>} : memref<1x8x32xf32, #tpu.memory_space<vmem>>, vector<1x8x32xf32>,
    %c0_20 = arith.constant 0 : index
    %c0_21 = arith.constant 0 : index
    %c0_22 = arith.constant 0 : index
    %26 = vector.load %arg12[%c0_20, %c0_21, %c0_22] : memref<1x8x8xf32, #tpu.memory_space<vmem>>, vector<1x8x8xf32>
    tpu.vector_store %arg12[%c0_20, %c0_21, %c0_22], %22 {strides = array<i32>} : memref<1x8x8xf32, #tpu.memory_space<vmem>>, vector<1x8x8xf32>,
    return
  }
  func.func @transform_0(%arg0: i32, %arg1: i32) -> (i32, i32, i32) {
    %c0_i32 = arith.constant 0 : i32
    %c0_i32_0 = arith.constant 0 : i32
    return %arg0, %arg1, %c0_i32 : i32, i32, i32
  }
  func.func @transform_1(%arg0: i32, %arg1: i32) -> (i32, i32, i32) {
    %c0_i32 = arith.constant 0 : i32
    %c0_i32_0 = arith.constant 0 : i32
    %c0_i32_1 = arith.constant 0 : i32
    return %arg0, %c0_i32, %c0_i32_0 : i32, i32, i32
  }
  func.func @transform_2(%arg0: i32, %arg1: i32) -> (i32, i32, i32) {
    %c0_i32 = arith.constant 0 : i32
    %c0_i32_0 = arith.constant 0 : i32
    %c0_i32_1 = arith.constant 0 : i32
    return %arg0, %c0_i32, %c0_i32_0 : i32, i32, i32
  }
  func.func @transform_3(%arg0: i32, %arg1: i32) -> (i32, i32) {
    %c0_i32 = arith.constant 0 : i32
    %c0_i32_0 = arith.constant 0 : i32
    %c0_i32_1 = arith.constant 0 : i32
    return %c0_i32, %c0_i32_0 : i32, i32
  }
  func.func @transform_4(%arg0: i32, %arg1: i32) -> (i32, i32) {
    %c0_i32 = arith.constant 0 : i32
    %c0_i32_0 = arith.constant 0 : i32
    %c0_i32_1 = arith.constant 0 : i32
    return %c0_i32, %c0_i32_0 : i32, i32
  }
  func.func @transform_5(%arg0: i32, %arg1: i32) -> (i32, i32) {
    %c0_i32 = arith.constant 0 : i32
    %c0_i32_0 = arith.constant 0 : i32
    %c0_i32_1 = arith.constant 0 : i32
    return %c0_i32, %c0_i32_0 : i32, i32
  }
  func.func @transform_6(%arg0: i32, %arg1: i32) -> (i32, i32) {
    %c0_i32 = arith.constant 0 : i32
    %c0_i32_0 = arith.constant 0 : i32
    %c0_i32_1 = arith.constant 0 : i32
    return %c0_i32, %c0_i32_0 : i32, i32
  }
  func.func @transform_7(%arg0: i32, %arg1: i32) -> (i32, i32) {
    %c0_i32 = arith.constant 0 : i32
    %c0_i32_0 = arith.constant 0 : i32
    %c0_i32_1 = arith.constant 0 : i32
    return %c0_i32, %c0_i32_0 : i32, i32
  }
  func.func @transform_8(%arg0: i32, %arg1: i32) -> (i32, i32) {
    %c0_i32 = arith.constant 0 : i32
    %c0_i32_0 = arith.constant 0 : i32
    %c0_i32_1 = arith.constant 0 : i32
    return %c0_i32, %c0_i32_0 : i32, i32
  }
  func.func @transform_9(%arg0: i32, %arg1: i32) -> (i32, i32, i32) {
    %c0_i32 = arith.constant 0 : i32
    %c0_i32_0 = arith.constant 0 : i32
    return %arg0, %arg1, %c0_i32 : i32, i32, i32
  }
  func.func @transform_10(%arg0: i32, %arg1: i32) -> (i32, i32, i32) {
    %c0_i32 = arith.constant 0 : i32
    %c0_i32_0 = arith.constant 0 : i32
    return %arg0, %arg1, %c0_i32 : i32, i32, i32
  }
}

</mosaic_0001>

<bundles_post_ra>
// kernel: tpu_custom_call.1
= control target key start
LH: loop header
LB: loop body
LE: loop exit
PB: predicated region body
PF: predicated region fallthrough
CT: control target
= control target key end

     0   :  { %s2169_s0 = inlined_call_operand.hbm [shape: f32[2,8,32], index: 0, kind: input, shape index: {}]   ;;  %s2170_s1 = inlined_call_operand.hbm [shape: f32[2,8,32], index: 1, kind: input, shape index: {}]   ;;  %s2171_s2 = inlined_call_operand.hbm [shape: f32[2,8,32], index: 2, kind: input, shape index: {}]   ;;  %s2172_s3 = inlined_call_operand.hbm [shape: f32[32,32], index: 3, kind: input, shape index: {}]   ;;  %s2173_s4 = inlined_call_operand.vmem [shape: f32[1,32], index: 4, kind: input, shape index: {}]   ;;  %s2174_s5 = inlined_call_operand.hbm [shape: f32[32,32], index: 5, kind: input, shape index: {}]   ;;  %s2175_s6 = inlined_call_operand.vmem [shape: f32[1,32], index: 6, kind: input, shape index: {}]   ;;  %s2176_s7 = inlined_call_operand.hbm [shape: f32[32,32], index: 7, kind: input, shape index: {}]   ;;  %s2177_s8 = inlined_call_operand.vmem [shape: f32[1,32], index: 8, kind: input, shape index: {}]   ;;  %s2178_s9 = inlined_call_operand.hbm [shape: f32[2,8,32], index: 9, kind: output, shape index: {0}]   ;;  %s2179_s10 = inlined_call_operand.hbm [shape: f32[2,8,8], index: 10, kind: output, shape index: {1}]  }
   0x1   :  { %2208 = sst [smem:[#allocation32_spill]] %s2170_s1 }
   0x2   :  { %2209 = sst [smem:[#allocation33_spill]] %s2172_s3 }
   0x3   :  { %2210 = sst [smem:[#allocation34_spill]] %s2173_s4 }
   0x4   :  { %2211 = sst [smem:[#allocation35_spill]] %s2177_s8 }
   0x5   :  { %2212 = sst [smem:[#allocation36_spill]] %s2178_s9 }
   0x6   :  { %2213 = sst [smem:[#allocation37_spill]] %s2179_s10 }
   0x7   :  { %16 = vsyncpa [#allocation5], 0 }
   0x8   :  { %18 = vsyncpa [#allocation5 + $0x1], 0 }
   0x9   :  { %19 = vsyncpa [#allocation8], 0 }
   0xa   :  { %21 = vsyncpa [#allocation8 + $0x1], 0 }
   0xb   :  { %22 = vsyncpa [#allocation11], 0 }
   0xc   :  { %23 = vsyncpa [#allocation14], 0 }
   0xd   :  { %24 = vsyncpa [#allocation6], 0 }
   0xe   :  { %26 = vsyncpa [#allocation6 + $0x1], 0 }
   0xf   :  { %27 = vsyncpa [#allocation17], 0 }
  0x10   :  { %29 = vsyncpa [#allocation17 + $0x1], 0  ;;  %s1771_s13 = smov 0   ;;  %s1773_s14 = smov 0  }
  0x11   :  { %s1775_s15 = smov 0   ;;  %s1777_s16 = smov 0  }
  0x12   :  { %s1779_s17 = smov 0   ;;  %s1781_s18 = smov 0  }
  0x13 LB: > { %2214 = sst [smem:[#allocation24_spill]] %s1681_s13  ;;  %s1802_s19 = sadd.s32 4294967295, %s1701_s18   ;;  %s1701_s18 = sphi %s1781_s18, %s35_s18   ;;  %s1697_s17 = sphi %s1779_s17, %s2261_s17   ;;  %s1693_s16 = sphi %s1777_s16, %s2260_s16   ;;  %s1689_s15 = sphi %s1775_s15, %s2264_s15   ;;  %s1685_s14 = sphi %s1773_s14, %s2263_s14   ;;  %s1681_s13 = sphi %s1771_s13, %s2262_s13  }
  0x14   : > { %2215 = sst [smem:[#allocation25_spill]] %s1693_s16  ;;  %s1168_s20 = sadd.s32 4294967294, %s1701_s18  }
  0x15   : > { %2216 = sst [smem:[#allocation26_spill]] %s1697_s17  ;;  %p69_p0 = scmp.ne.s32.totalorder %s1685_s14, %s1681_s13 }
  0x16   : > { %2217 = sst [smem:[#allocation27_spill]] %s1701_s18  ;;  %p2181_p1 = scmp.eq.s32.totalorder %s1802_s19, 0 }
  0x17   : > { %p279_p3 = scmp.eq.s32.totalorder %s1168_s20, 1  ;;  %p1169_p5 = scmp.ge.s32.totalorder %s1701_s18, 1 }
  0x18   : > { %p1811_p4 = por %p2181_p1, %p69_p0  ;;  %p314_p7 = scmp.lt.s32.totalorder %s1701_s18, 3 }
  0x19   : > { %p1816_p6 = por %p279_p3, %p69_p0  ;;  %s1703_s24 = smov [#allocation10]  }
  0x1a   : > { %s2218_s21 = scalar_select %p1811_p4, 1, 0 }
  0x1b   : > { %s2219_s22 = scalar_select %p1816_p6, 1, 0 }
  0x1c   : > { %p1821_p8 = pnand %p1169_p5, %p314_p7  ;;  %s326_s25 = sshll.u32 %s1703_s24, 4  ;;  %s327_s25 = int_to_ptr.vmem [resolvable:$true] %s326_s25 }
  0x1d   : > { %2220 = sst [smem:[#allocation28_spill]] %s2219_s22  ;;  %s47_s27 = sadd.s32 1, %s1697_s17 }
  0x1e   : > { %s2221_s23 = scalar_select %p1821_p8, 1, 0 }
  0x1f   : > { %p1306_p9 = pneg %p1821_p8  ;;  %s2223_s3 = sld [smem:[#allocation33_spill]] }
  0x21   : > { %p1830_p11 = pnand %p1306_p9, %p2181_p1 }
  0x23   : > { %s2222_s26 = scalar_select %p1830_p11, 1, 0 }
  0x24   : > { %p1843_p13 = pneg %p1830_p11 }
  0x25   : > { %s1401_s30 = scalar_lea.hbm %s2223_s3, 512 }
  0x26   : > { %p1402_p12 = scmp.ne.s32.totalorder %s2223_s3, %s1401_s30  ;;  %p1408_p5 = scmp.lt.u32.totalorder %s1401_s30, %s2223_s3 }
  0x27   : > { %s2224_s20 = scalar_select %p1843_p13, 1, 0 }
  0x28   : > { %p1404_p0 = pnand %p1843_p13, %p1402_p12 }
  0x2a   : > { %p1405_p3 = pneg %p1404_p0 }
  0x2c   : > { %p1410_p7 = pnand %p1408_p5, %p1405_p3 }
  0x2e   : > { %1413 = shalt.err (!%p1410_p7)
}
  0x2f   : > { %s1414_s28 = scalar_lea.vmem %s327_s25, 512  ;;  %p1422_p2 = scmp.lt.s32.totalorder %s327_s25, %s327_s25 }
  0x30   : > { %p1415_p9 = scmp.ne.s32.totalorder %s327_s25, %s1414_s28  ;;  %p1423_p6 = scmp.lt.s32.totalorder %s1414_s28, %s1414_s28 }
  0x32   : > { %p1417_p10 = pnand %p1415_p9, %p1843_p13  ;;  %p1424_p4 = por %p1423_p6, %p1422_p2 }
  0x34   : > { %p1418_p1 = pneg %p1417_p10 }
  0x36   : > { %p1425_p8 = pnand %p1424_p4, %p1418_p1 }
  0x38   : > { %1428 = shalt.err (!%p1425_p8)
}
  0x39   : > { %s2185_s29 = smov 128   ;;  %s2187_s22 = smov 8  }
  0x3a   : > { %1309 = dma.hbm_to_vmem [thread:$0]  (!%p1830_p11), %s2223_s3, 512, %s327_s25, [#allocation11], %s2185_s29, %s2185_s29, %s2187_s22  }
  0x3b   : > { %p49_p1 = scmp.ge.s32.totalorder %s47_s27, 2  ;;  %s56_s12 = sadd.s32 1, %s1689_s15 }
  0x3c   : > { %p63_p2 = scmp.ne.s32.totalorder %s1689_s15, %s1685_s14  ;;  %p64_p4 = scmp.eq.s32.totalorder %s1701_s18, 0 }
  0x3d   : > { %s2266_s27 = smov (%p49_p1, %s47_s27), 0  ;;  %p2226_p8 = scmp.eq.s32.totalorder %s1802_s19, 1 }
  0x3e   : > { %2225 = sst [smem:[#allocation29_spill]] %s2266_s27  ;;  %p65_p6 = por %p64_p4, %p63_p2 }
  0x3f   : > { %p1870_p10 = por %p2226_p8, %p63_p2  ;;  %s51_s28 = ssub.s32 %s1697_s17, %s2266_s27 }
  0x40   : > { %p1336_p12 = scmp.lt.s32.totalorder %s1701_s18, 2  ;;  %p54_p0 = scmp.eq.s32.totalorder %s51_s28, 0 }
  0x41   : > { %s2227_s24 = scalar_select %p1870_p10, 1, 0 }
  0x42   : > { %s2190_s13 = sand.u32 1, %s1689_s15   ;;  %s1883_s30 = sshll.u32 %s1697_s17, 7 }
  0x43   : > { %2228 = sst [smem:[#allocation30_spill]] %s2227_s24  ;;  %s1880_s25 = sshll.u32 %s2190_s13, 3 }
  0x44   : > { %s1886_s11 = scalar_select %p54_p0, %s1689_s15, %s56_s12  }
  0x45   : > { %p1888_p3 = pnand %p1336_p12, %p65_p6  ;;  %s394_s22 = sand.u32 1, %s1701_s18  }
  0x46   : > { %2229 = sst [smem:[#allocation31_spill]] %s1886_s11  ;;  %s398_s13 = scalar_lea.vmem [#allocation7], %s1880_s25 }
  0x47   : > { %s2230_s29 = scalar_select %p1888_p3, 1, 0 }
  0x48   : > { %s2231_s1 = sld [smem:[#allocation32_spill]]  ;;  %s405_s17 = sshll.u32 %s398_s13, 4  ;;  %s1900_s17 = int_to_ptr.vmem [resolvable:$true] %s405_s17 }
  0x49   : > { %s1706_s12 = smov [#allocation12]   ;;  %s1904_s9 = scalar_lea.sflag [#allocation8], %s394_s22 }
  0x4a   : > { %s1902_s11 = sshll.u32 %s1706_s12, 4  ;;  %p1910_p7 = pneg %p1888_p3  ;;  %s343_s11 = int_to_ptr.vmem [resolvable:$true] %s1902_s11 }
  0x4c   : > { %s2232_s3 = scalar_select %p1910_p7, 1, 0 }
  0x4e   : > { %s1897_s28 = scalar_lea.hbm %s2231_s1, %s1883_s30  ;;  %s1434_s18 = scalar_lea.hbm %s2231_s1, 256 }
  0x4f   : > { %s1429_s10 = scalar_lea.hbm %s1897_s28, 128  ;;  %p1435_p2 = scmp.lt.u32.totalorder %s1897_s28, %s2231_s1 }
  0x50   : > { %p1430_p5 = scmp.ne.s32.totalorder %s1897_s28, %s1429_s10  ;;  %p1436_p4 = scmp.lt.u32.totalorder %s1434_s18, %s1429_s10 }
  0x51   : > { %p1438_p8 = scmp.lt.u32.totalorder %s1429_s10, %s1897_s28 }
  0x52   : > { %p1432_p9 = pnand %p1910_p7, %p1430_p5  ;;  %p1437_p6 = por %p1436_p4, %p1435_p2 }
  0x54   : > { %p1433_p1 = pneg %p1432_p9  ;;  %p1439_p12 = por %p1438_p8, %p1437_p6 }
  0x56   : > { %p1440_p0 = pnand %p1439_p12, %p1433_p1 }
  0x58   : > { %1443 = shalt.err (!%p1440_p0)
}
  0x59   : > { %s1444_s22 = scalar_lea.vmem %s1900_s17, 128  ;;  %s1707_s27 = smov [#allocation7]  }
  0x5a   : > { %p1445_p5 = scmp.ne.s32.totalorder %s1900_s17, %s1444_s22  ;;  %s1449_s13 = sshll.u32 %s1707_s27, 4  ;;  %s1450_s13 = int_to_ptr.vmem [resolvable:$false] %s1449_s13 }
  0x5b   : > { %s1451_s24 = scalar_lea.vmem %s1450_s13, 256  ;;  %p1452_p11 = scmp.lt.s32.totalorder %s1900_s17, %s1450_s13 }
  0x5c   : > { %p1447_p9 = pnand %p1445_p5, %p1910_p7  ;;  %p1453_p13 = scmp.lt.s32.totalorder %s1451_s24, %s1444_s22 }
  0x5e   : > { %p1448_p10 = pneg %p1447_p9  ;;  %p1454_p2 = por %p1453_p13, %p1452_p11 }
  0x60   : > { %p1455_p4 = pnand %p1454_p2, %p1448_p10 }
  0x62   : > { %1458 = shalt.err (!%p1455_p4)
}
  0x63   : > { %1322 = dma.hbm_to_vmem [thread:$0]  (!%p1888_p3), %s1897_s28, 128, %s1900_s17, %s1904_s9  }
  0x64   : > { %s1459_s12 = scalar_lea.hbm %s2174_s5, 512  ;;  %p2233_p11 = scmp.ne.s32.totalorder %s2224_s20, 0 }
  0x65   : > { %p1460_p1 = scmp.ne.s32.totalorder %s2174_s5, %s1459_s12  ;;  %p1466_p6 = scmp.lt.u32.totalorder %s1459_s12, %s2174_s5 }
  0x67   : > { %p1462_p13 = pnand %p1460_p1, %p2233_p11 }
  0x69   : > { %p1463_p10 = pneg %p1462_p13 }
  0x6b   : > { %p1468_p8 = pnand %p1466_p6, %p1463_p10 }
  0x6d   : > { %1471 = shalt.err (!%p1468_p8)
}
  0x6e   : > { %s1472_s24 = scalar_lea.vmem %s343_s11, 512  ;;  %p1480_p9 = scmp.lt.s32.totalorder %s343_s11, %s343_s11 }
  0x6f   : > { %p1473_p12 = scmp.ne.s32.totalorder %s343_s11, %s1472_s24  ;;  %p1481_p2 = scmp.lt.s32.totalorder %s1472_s24, %s1472_s24 }
  0x71   : > { %p1475_p0 = pnand %p1473_p12, %p2233_p11  ;;  %p1482_p4 = por %p1481_p2, %p1480_p9 }
  0x73   : > { %p1476_p5 = pneg %p1475_p0 }
  0x75   : > { %p1483_p3 = pnand %p1482_p4, %p1476_p5 }
  0x77   : > { %1486 = shalt.err (!%p1483_p3)
}
  0x78   : > { %p2234_p1 = scmp.ne.s32.totalorder %s2222_s26, 0  ;;  %s2235_s1 = smov 8  }
  0x79   : > { %s2236_s17 = smov 128   ;;  %s1708_s18 = smov [#allocation13]  }
  0x7a   : > { %1312 = dma.hbm_to_vmem [thread:$0]  (!%p2234_p1), %s2174_s5, 512, %s343_s11, [#allocation11], %s2236_s17, %s2236_s17, %s2235_s1  }
  0x7b   : > { %s358_s12 = sshll.u32 %s1708_s18, 4  ;;  %s1487_s13 = scalar_lea.hbm %s2176_s7, 512  ;;  %s359_s12 = int_to_ptr.vmem [resolvable:$true] %s358_s12 }
  0x7c   : > { %p1488_p3 = scmp.ne.s32.totalorder %s2176_s7, %s1487_s13  ;;  %p1494_p6 = scmp.lt.u32.totalorder %s1487_s13, %s2176_s7 }
  0x7e   : > { %p1490_p13 = pnand %p1488_p3, %p2233_p11 }
  0x80   : > { %p1491_p10 = pneg %p1490_p13 }
  0x82   : > { %p1496_p8 = pnand %p1494_p6, %p1491_p10 }
  0x84   : > { %1499 = shalt.err (!%p1496_p8)
}
  0x85   : > { %s1500_s11 = scalar_lea.vmem %s359_s12, 512  ;;  %p1508_p9 = scmp.lt.s32.totalorder %s359_s12, %s359_s12 }
  0x86   : > { %p1501_p12 = scmp.ne.s32.totalorder %s359_s12, %s1500_s11  ;;  %p1509_p2 = scmp.lt.s32.totalorder %s1500_s11, %s1500_s11 }
  0x88   : > { %p1503_p0 = pnand %p1501_p12, %p2233_p11  ;;  %p1510_p4 = por %p1509_p2, %p1508_p9 }
  0x8a   : > { %p1504_p5 = pneg %p1503_p0 }
  0x8c   : > { %p1511_p7 = pnand %p1510_p4, %p1504_p5 }
  0x8e   : > { %1514 = shalt.err (!%p1511_p7)
}
  0x8f   : > { %1315 = dma.hbm_to_vmem [thread:$0]  (!%p2234_p1), %s2176_s7, 512, %s359_s12, [#allocation14], %s2236_s17, %s2236_s17, %s2235_s1  }
  0x90   : > { %s1981_s28 = scalar_lea.hbm %s2169_s0, %s1883_s30  ;;  %s379_s26 = scalar_lea.vmem [#allocation4], %s1880_s25 }
  0x91   : > { %s387_s10 = sshll.u32 %s379_s26, 4  ;;  %s2237_s18 = sand.u32 1, %s1689_s15   ;;  %s388_s10 = int_to_ptr.vmem [resolvable:$true] %s387_s10 }
  0x92   : > { %s376_s27 = scalar_lea.sflag [#allocation5], %s2237_s18  ;;  %s1515_s22 = scalar_lea.hbm %s1981_s28, 128 }
  0x93   : > { %p1516_p7 = scmp.ne.s32.totalorder %s1981_s28, %s1515_s22  ;;  %p2238_p11 = scmp.ne.s32.totalorder %s2232_s3, 0 }
  0x94   : > { %s1520_s12 = scalar_lea.hbm %s2169_s0, 256  ;;  %p1521_p1 = scmp.lt.u32.totalorder %s1981_s28, %s2169_s0 }
  0x95   : > { %p1518_p3 = pnand %p1516_p7, %p2238_p11  ;;  %p1522_p10 = scmp.lt.u32.totalorder %s1520_s12, %s1515_s22 }
  0x96   : > { %p1524_p8 = scmp.lt.u32.totalorder %s1515_s22, %s1981_s28 }
  0x97   : > { %p1519_p13 = pneg %p1518_p3  ;;  %p1523_p6 = por %p1522_p10, %p1521_p1 }
  0x99   : > { %p1525_p12 = por %p1524_p8, %p1523_p6 }
  0x9b   : > { %p1526_p0 = pnand %p1525_p12, %p1519_p13 }
  0x9d   : > { %1529 = shalt.err (!%p1526_p0)
}
  0x9e   : > { %s1530_s11 = scalar_lea.vmem %s388_s10, 128  ;;  %s1709_s4 = smov [#allocation4]  }
  0x9f   : > { %p1531_p5 = scmp.ne.s32.totalorder %s388_s10, %s1530_s11  ;;  %s1535_s8 = sshll.u32 %s1709_s4, 4  ;;  %s1536_s8 = int_to_ptr.vmem [resolvable:$false] %s1535_s8 }
  0xa0   : > { %s1537_s16 = scalar_lea.vmem %s1536_s8, 256  ;;  %p1538_p4 = scmp.lt.s32.totalorder %s388_s10, %s1536_s8 }
  0xa1   : > { %p1533_p9 = pnand %p1531_p5, %p2238_p11  ;;  %p1539_p7 = scmp.lt.s32.totalorder %s1537_s16, %s1530_s11 }
  0xa3   : > { %p1534_p2 = pneg %p1533_p9  ;;  %p1540_p3 = por %p1539_p7, %p1538_p4 }
  0xa5   : > { %p1541_p1 = pnand %p1540_p3, %p1534_p2 }
  0xa7   : > { %1544 = shalt.err (!%p1541_p1)
}
  0xa8   : > { %p2239_p10 = scmp.ne.s32.totalorder %s2230_s29, 0  ;;  %s2007_s18 = scalar_lea.hbm %s2171_s2, %s1883_s30 }
  0xa9   : > { %s416_s22 = scalar_lea.vmem [#allocation9], %s1880_s25  ;;  %s1545_s17 = scalar_lea.hbm %s2007_s18, 128 }
  0xaa   : > { %1319 = dma.hbm_to_vmem [thread:$0]  (!%p2239_p10), %s1981_s28, 128, %s388_s10, %s376_s27  }
  0xab   : > { %s423_s1 = sshll.u32 %s416_s22, 4  ;;  %p1546_p13 = scmp.ne.s32.totalorder %s2007_s18, %s1545_s17  ;;  %s424_s1 = int_to_ptr.vmem [resolvable:$true] %s423_s1 }
  0xac   : > { %s1550_s28 = scalar_lea.hbm %s2171_s2, 256  ;;  %p1551_p12 = scmp.lt.u32.totalorder %s2007_s18, %s2171_s2 }
  0xad   : > { %p1548_p6 = pnand %p1546_p13, %p2238_p11  ;;  %p1552_p0 = scmp.lt.u32.totalorder %s1550_s28, %s1545_s17 }
  0xae   : > { %p1554_p9 = scmp.lt.u32.totalorder %s1545_s17, %s2007_s18 }
  0xaf   : > { %p1549_p8 = pneg %p1548_p6  ;;  %p1553_p5 = por %p1552_p0, %p1551_p12 }
  0xb1   : > { %p1555_p2 = por %p1554_p9, %p1553_p5 }
  0xb3   : > { %p1556_p4 = pnand %p1555_p2, %p1549_p8 }
  0xb5   : > { %1559 = shalt.err (!%p1556_p4)
}
  0xb6   : > { %s1560_s25 = scalar_lea.vmem %s424_s1, 128  ;;  %s1710_s30 = smov [#allocation9]  }
  0xb7   : > { %p1561_p7 = scmp.ne.s32.totalorder %s424_s1, %s1560_s25  ;;  %s1565_s24 = sshll.u32 %s1710_s30, 4  ;;  %s1566_s24 = int_to_ptr.vmem [resolvable:$false] %s1565_s24 }
  0xb8   : > { %s1567_s11 = scalar_lea.vmem %s1566_s24, 256  ;;  %p1568_p13 = scmp.lt.s32.totalorder %s424_s1, %s1566_s24 }
  0xb9   : > { %p1563_p3 = pnand %p1561_p7, %p2238_p11  ;;  %p1569_p6 = scmp.lt.s32.totalorder %s1567_s11, %s1560_s25 }
  0xbb   : > { %p1564_p1 = pneg %p1563_p3  ;;  %p1570_p10 = por %p1569_p6, %p1568_p13 }
  0xbd   : > { %p1571_p0 = pnand %p1570_p10, %p1564_p1 }
  0xbf   : > { %1574 = shalt.err (!%p1571_p0)
}
  0xc0   : > { %p2240_p12 = scmp.ne.s32.totalorder %s2230_s29, 0  ;;  %p2241_p8 = scmp.ne.s32.totalorder %s2221_s23, 0 }
  0xc1   : > { %s2031_s3 = sand.u32 (!%p2241_p8), 1, %s1685_s14   ;;  %p2242_p11 = scmp.ne.s32.totalorder (!%p2241_p8), %s2218_s21, 0 }
  0xc2   : > { %1325 = dma.hbm_to_vmem [thread:$0]  (!%p2240_p12), %s2007_s18, 128, %s424_s1, %s1904_s9  }
  0xc3   : > { %432 = sbr.rel (%p2241_p8) target bundleno = 1201 (0x4b1), region = 56  ;;  %s2034_s4 = sshll.u32 (!%p2241_p8), %s2031_s3, 3 }
  0xc4   : > { %s435_s8 = scalar_lea.sflag (!%p2241_p8), [#allocation5], %s2031_s3  ;;  %s438_s16 = scalar_lea.vmem (!%p2241_p8), [#allocation4], %s2034_s4 }
  0xca   : > { %1656 = dma.done.wait (%p2242_p11), %s435_s8, 128  }
  0xcb   : > { %1658 = vsyncadd (%p2242_p11), %s435_s8, 4294967168  ;;  %s443_s9 = sand.u32 1, %s1802_s19   ;;  %s447_s29 = scalar_lea.vmem [#allocation7], %s2034_s4 }
  0xcc   : > { %s444_s23 = scalar_lea.sflag [#allocation8], %s443_s9 }
  0xcd   : > { %1660 = dma.done.wait (%p2242_p11), %s444_s23, 256  }
  0xce   : > { %1662 = vsyncadd (%p2242_p11), %s444_s23, 4294967040  ;;  %s456_s20 = scalar_lea.vmem [#allocation9], %s2034_s4  ;;  %p2243_p10 = scmp.eq.s32.totalorder %s1802_s19, 0 }
  0xd0   : > { %1664 = dma.done.wait (%p2243_p10), [#allocation11], 1024   ;;  %p2244_p5 = pmov %p2243_p10 }
  0xd2   : > { %1666 = vsyncadd (%p2244_p5), [#allocation11], 4294966272  ;;  %p2245_p9 = pmov %p2244_p5 }
  0xd3   : > { %p2246_p2 = pmov %p2244_p5 }
  0xd4   : > { %1668 = dma.done.wait (%p2245_p9), [#allocation14], 512  }
  0xd5   : > { %1670 = vsyncadd (%p2246_p2), [#allocation14], 4294966784  ;;  %v1711_v0 = vmov 0.0|0.0   ;;  %vm1712_vm0 = vmmov 0   ;;  %v1713_v1 = vmov 0.0   ;;  %v526_v2 = vld [vmem:[#allocation12] sm:$0xff] }
  0xd6   : > { %1266 = vmatprep.subr.bf16.mxu0 %v1711_v0  ;;  %1231 = vmatprep.mubr.msk.f32.mxu0 %vm1712_vm0, %v1713_v1  ;;  %v527_v3 = vld [vmem:[#allocation12 + $0x8] sm:$0xff]  ;;  %v528_v4 = vld [vmem:[#allocation12 + $0x10] sm:$0xff]  ;;  %v529_v6 = vld [vmem:[#allocation12 + $0x18] sm:$0xff]  ;;  %vm537_vm1 = vcmask 261120   ;;  %s2247_s22 = sld [smem:[#allocation34_spill]]  ;;  %s2248_s12 = sld [smem:[#allocation35_spill]] }
  0xd7   : > { %1272 = vmatprep.subr.bf16.mxu1 %v1711_v0  ;;  %1242 = vmatprep.mubr.msk.f32.mxu1 %vm1712_vm0, %v1713_v1  ;;  %v1267_v5 = vpack.c.bf16 %v527_v3, %v526_v2  ;;  %v1270_v7 = vpack.c.bf16 %v529_v6, %v528_v4  ;;  %v611_v8 = vld [vmem:[#allocation13] sm:$0xff]  ;;  %v612_v9 = vld [vmem:[#allocation13 + $0x8] sm:$0xff]  ;;  %v700_v15 = vld [vmem:[#allocation10 + $0x10] sm:$0xff]  ;;  %vm860_vm2 = vcmask 64512   ;;  %s2249_s13 = sld [smem:[#allocation25_spill]]  ;;  %s2250_s28 = sld [smem:[#allocation30_spill]] }
  0xd8   : > { %v698_v10 = vld [vmem:[#allocation10] sm:$0xff]  ;;  %v699_v11 = vld [vmem:[#allocation10 + $0x8] sm:$0xff]  ;;  %v1273_v12 = vpack.c.bf16 %v612_v9, %v611_v8  ;;  %v701_v16 = vld [vmem:[#allocation10 + $0x18] sm:$0xff]  ;;  %s519_s10 = scalar_lea.vmem [#allocation16], %s2034_s4  ;;  %s2251_s24 = sld [smem:[#allocation37_spill]] }
  0xd9   : > { %1268 = vmatpush3.bf16.msra.mxu0 %v1267_v5  ;;  %v524_v13 = vld [vmem:[%s447_s29] sm:$0xff]  ;;  %v1279_v14 = vpack.c.bf16 %v699_v11, %v698_v10  ;;  %v1282_v17 = vpack.c.bf16 %v701_v16, %v700_v15  ;;  %v697_v18 = vld [vmem:[%s438_s16] sm:$0xff]  ;;  %s982_s8 = sshll.u32 %s519_s10, 4  ;;  %s954_s16 = scalar_lea.sflag [#allocation17], %s2031_s3  ;;  %s983_s8 = int_to_ptr.vmem [resolvable:$true] %s982_s8 }
  0xda   : > { %1269 = vmatprep.subr.bf16.mxu0 %v1711_v0  ;;  %1274 = vmatpush3.bf16.msra.mxu1 %v1273_v12  ;;  %v613_v19 = vld [vmem:[#allocation13 + $0x10] sm:$0xff]  ;;  %v614_v20 = vld [vmem:[#allocation13 + $0x18] sm:$0xff]  ;;  %v1189_v23 = vld [vmem:[%s2175_s6] ss:$0 sm:$0xff]  ;;  %s1575_s9 = scalar_lea.vmem %s983_s8, 128  ;;  %s1714_s23 = smov [#allocation16]  }
  0xdb   : > { %1275 = vmatprep.subr.bf16.mxu1 %v1711_v0  ;;  %v1276_v21 = vpack.c.bf16 %v614_v20, %v613_v19  ;;  %v525_v22 = vld [vmem:[%s456_s20] sm:$0xff]  ;;  %p1576_p4 = scmp.ne.s32.totalorder %s983_s8, %s1575_s9  ;;  %s1579_s29 = sshll.u32 %s1714_s23, 4  ;;  %s1580_s29 = int_to_ptr.vmem [resolvable:$false] %s1579_s29 }
  0xdc   : > { %v1193_v27 = vld [vmem:[%s2247_s22] ss:$0 sm:$0xff]  ;;  %s1581_s20 = scalar_lea.vmem %s1580_s29, 256  ;;  %p1582_p13 = scmp.lt.s32.totalorder %s983_s8, %s1580_s29 }
  0xdd   : > { %1271 = vmatpush3.bf16.msra.mxu0 %v1270_v7  ;;  %v1191_v32 = vld [vmem:[%s2248_s12] ss:$0 sm:$0xff]  ;;  %s1200_s27 = sshll.u32 %s2249_s13, 7  ;;  %p2252_p7 = scmp.ne.s32.totalorder %s2250_s28, 0 }
  0xde   : > { %1278 = vmatprep.subr.bf16.mxu0 %v1711_v0  ;;  %1277 = vmatpush3.bf16.msra.mxu1 %v1276_v21  ;;  %s2093_s11 = scalar_lea.hbm %s2251_s24, %s1200_s27  ;;  %p1583_p6 = scmp.lt.s32.totalorder %s1581_s20, %s1575_s9 }
  0xdf   : > { %1256 = vmatprep.subr.mxu1 %v1713_v1  ;;  %p1577_p3 = pnand %p1576_p4, %p2252_p7 }
  0xe0   : > { %1232 = vmatmul.mubr.msk.f32.vlgmr.msra.gmra.mrb[0].mxu0 %vm537_vm1, %v524_v13  ;;  %p1584_p0 = por %p1583_p6, %p1582_p13 }
  0xe1   : > { %1280 = vmatpush3.bf16.msra.mxu0 %v1279_v14  ;;  %1253 = vmatprep.mubr.msk.f32.mxu0 %vm1712_vm0, %v1713_v1  ;;  %p1578_p1 = pneg %p1577_p3 }
  0xe2   : > { %1281 = vmatprep.subr.bf16.mxu0 %v1711_v0  ;;  %1243 = vmatmul.mubr.msk.f32.vlgmr.msra.gmra.mrb[0].mxu1 %vm537_vm1, %v525_v22 }
  0xe3   : > { %1258 = vmatprep.mubr.msk.f32.mxu1 %vm1712_vm0, %v1713_v1  ;;  %p1585_p12 = pnand %p1584_p0, %p1578_p1 }
  0xe5   : > { %1283 = vmatpush3.bf16.msra.mxu0 %v1282_v17 }
  0xe8   : > { %1254 = vmatmul.mubr.msk.f32.vlgmr.msra.gmra.mrb[2].mxu0 %vm537_vm1, %v697_v18 }
 0x1b3   : > { %v607_v24 = vpop.f32.mrb[0].mxu0 }
 0x1b4   : > { %v608_v25 = vadd.f32 %v1189_v23, %v607_v24  ;;  %v1233_v26 = vpop.f32.mrb[1].mxu0 }
 0x1b5   : > { %v691_v33 = vpop.f32.mrb[0].mxu1 }
 0x1b6   : > { %695 = vst.msk [vmem:[#allocation2] sm:$0xff] %vm537_vm1, %v608_v25  ;;  %v692_v34 = vadd.f32 %v1191_v32, %v691_v33  ;;  %v1244_v35 = vpop.f32.mrb[1].mxu1 }
 0x1b8   : > { %696 = vst.msk [vmem:[#allocation3] sm:$0xff] %vm537_vm1, %v692_v34 }
 0x1bb   : > { %v779_v28 = vpop.f32.mrb[2].mxu0 }
 0x1bc   : > { %v1255_v29 = vpop.f32.mrb[3].mxu0  ;;  %v780_v30 = vadd.f32 %v1193_v27, %v779_v28 }
 0x1bd   : > { %v783_v31 = vld [vmem:[#allocation2] sm:$0xff] }
 0x1be   : > { %1257 = vmatpush3.xpose.msk.msra.mxu1 %vm537_vm1, %v783_v31 }
 0x1bf   : > { %1261 = vmatprep.subr.mxu1 %v1713_v1  ;;  %v872_v36 = vld [vmem:[#allocation3] sm:$0xff] }
 0x1c1   : > { %1259 = vmatmul.mubr.msk.f32.vlgmr.msra.gmra.mrb[2].mxu1 %vm537_vm1, %v780_v30 }
 0x1c2   : > { %1263 = vmatprep.mubr.msk.f32.mxu1 %vm1712_vm0, %v1713_v1  ;;  %1262 = vmatpush3.msra.mxu1 %v872_v36 }
 0x294   : > { %v856_v37 = vpop.f32.mrb[2].mxu1 }
 0x295   : > { %v1260_v38 = vpop.f32.mrb[3].mxu1  ;;  %v861_v39 = vsel %vm860_vm2, %v856_v37, -inf }
 0x296   : > { %862 = vmax.xlane.f32.xlu0 %v861_v39 }
 0x323   : > { %v863_v40 = vpop.xlane.xlu0 %862 }
 0x324   : > { %v864_v41 = vsub.f32 %v856_v37, %v863_v40 }
 0x326   : > { %v865_v42 = vmul.f32 1.442695, %v864_v41 }
 0x328   : > { %1397 = vpow2.f32 %v865_v42 }
 0x332   : > { %v1398_v43 = vpop.eup %1397 }
 0x333   : > { %v867_v44 = vsel %vm860_vm2, %v1398_v43, 0.0 }
 0x334   : > { %868 = vadd.xlane.f32.xlu0 %v867_v44 }
 0x3c1   : > { %v869_v45 = vpop.xlane.xlu0 %868 }
 0x3c2   : > { %1399 = vrcp.f32 %v869_v45 }
 0x3cc   : > { %v1400_v46 = vpop.eup %1399 }
 0x3cd   : > { %v871_v47 = vmul.f32 %v1400_v46, %v1398_v43 }
 0x3cf   : > { %1264 = vmatmul.mubr.msk.f32.vlgmr.msra.gmra.mrb[4].mxu1 %vm860_vm2, %v871_v47  ;;  %947 = vst.msk [vmem:[%s519_s10] sm:$0xff] %vm860_vm2, %v871_v47 }
 0x3d0   : > { %1588 = shalt.err (!%p1585_p12)
}
 0x3d1   : > { %s1589_s19 = scalar_lea.hbm %s2093_s11, 128  ;;  %s1593_s18 = scalar_lea.hbm %s2251_s24, 256 }
 0x3d2   : > { %p1590_p8 = scmp.ne.s32.totalorder %s2093_s11, %s1589_s19  ;;  %p1594_p5 = scmp.lt.u32.totalorder %s2093_s11, %s2251_s24 }
 0x3d3   : > { %p1595_p9 = scmp.lt.u32.totalorder %s1593_s18, %s1589_s19  ;;  %p1597_p4 = scmp.lt.u32.totalorder %s1589_s19, %s2093_s11 }
 0x3d4   : > { %p1591_p11 = pnand %p1590_p8, %p2252_p7 }
 0x3d5   : > { %p1596_p2 = por %p1595_p9, %p1594_p5 }
 0x3d6   : > { %p1592_p10 = pneg %p1591_p11 }
 0x3d7   : > { %p1598_p3 = por %p1597_p4, %p1596_p2 }
 0x3d9   : > { %p1599_p1 = pnand %p1598_p3, %p1592_p10 }
 0x3db   : > { %1602 = shalt.err (!%p1599_p1)
}
 0x3dc   : > { %1303 = dma.vmem_to_hbm [thread:$0]  (%p2252_p7), %s983_s8, 128, %s2093_s11, %s954_s16  }
 0x3dd   : > { %s512_s17 = scalar_lea.vmem [#allocation15], %s2034_s4  ;;  %s2253_s30 = sld [smem:[#allocation36_spill]] }
 0x3de   : > { %s968_s12 = sshll.u32 %s512_s17, 4  ;;  %s949_s23 = scalar_lea.sflag [#allocation6], %s2031_s3  ;;  %s2121_s12 = int_to_ptr.vmem [resolvable:$true] %s968_s12 }
 0x3df   : > { %s1603_s29 = scalar_lea.vmem %s2121_s12, 128  ;;  %s1715_s4 = smov [#allocation15]  }
 0x3e0   : > { %p1604_p13 = scmp.ne.s32.totalorder %s2121_s12, %s1603_s29  ;;  %s1607_s13 = sshll.u32 %s1715_s4, 4  ;;  %s1608_s13 = int_to_ptr.vmem [resolvable:$false] %s1607_s13 }
 0x3e1   : > { %p1610_p12 = scmp.lt.s32.totalorder %s2121_s12, %s1608_s13 }
 0x3e2   : > { %p1605_p6 = pnand %p1604_p13, %p2252_p7 }
 0x3e3   : > { %s2119_s9 = scalar_lea.hbm %s2253_s30, %s1200_s27  ;;  %s1609_s27 = scalar_lea.vmem %s1608_s13, 256 }
 0x3e4   : > { %p1606_p0 = pneg %p1605_p6  ;;  %p1611_p8 = scmp.lt.s32.totalorder %s1609_s27, %s1603_s29 }
 0x3e6   : > { %p1612_p11 = por %p1611_p8, %p1610_p12 }
 0x3e8   : > { %p1613_p10 = pnand %p1612_p11, %p1606_p0 }
 0x4a2   : > { %v942_v48 = vpop.f32.mrb[4].mxu1 }
 0x4a3   : > { %946 = vst.msk [vmem:[%s512_s17] sm:$0xff] %vm537_vm1, %v942_v48  ;;  %v1265_v49 = vpop.f32.mrb[5].mxu1 }
 0x4a4   : > { %1616 = shalt.err (!%p1613_p10)
}
 0x4a5   : > { %s1617_s3 = scalar_lea.hbm %s2119_s9, 128  ;;  %s1621_s16 = scalar_lea.hbm %s2253_s30, 256 }
 0x4a6   : > { %p1618_p5 = scmp.ne.s32.totalorder %s2119_s9, %s1617_s3  ;;  %p1622_p4 = scmp.lt.u32.totalorder %s2119_s9, %s2253_s30 }
 0x4a7   : > { %p1623_p3 = scmp.lt.u32.totalorder %s1621_s16, %s1617_s3  ;;  %p1625_p13 = scmp.lt.u32.totalorder %s1617_s3, %s2119_s9 }
 0x4a8   : > { %p1619_p9 = pnand %p1618_p5, %p2252_p7 }
 0x4a9   : > { %p1624_p1 = por %p1623_p3, %p1622_p4 }
 0x4aa   : > { %p1620_p2 = pneg %p1619_p9 }
 0x4ab   : > { %p1626_p6 = por %p1625_p13, %p1624_p1 }
 0x4ad   : > { %p1627_p0 = pnand %p1626_p6, %p1620_p2 }
 0x4af   : > { %1630 = shalt.err (!%p1627_p0)
}
 0x4b0   : > { %1302 = dma.vmem_to_hbm [thread:$0]  (%p2252_p7), %s2121_s12, 128, %s2119_s9, %s949_s23  }
 0x4b1 PF: > { %s2254_s21 = sld [smem:[#allocation24_spill]]  ;;  %s2255_s26 = sld [smem:[#allocation28_spill]] }
 0x4b2   : > { %s2256_s18 = sld [smem:[#allocation27_spill]] }
 0x4b7   : > { %s994_s22 = sand.u32 1, %s2254_s21   ;;  %p2257_p12 = scmp.ne.s32.totalorder %s2255_s26, 0 }
 0x4b8   : > { %p2258_p8 = scmp.ge.s32.totalorder %s2256_s18, 2  ;;  %s995_s1 = scalar_lea.sflag [#allocation6], %s994_s22 }
 0x4ba   : > { %p1327_p11 = pnand %p2258_p8, %p2257_p12 }
 0x4bc   : > { %1672 = dma.done.wait (!%p1327_p11), %s995_s1, 128  }
 0x4bd   : > { %1674 = vsyncadd (!%p1327_p11), %s995_s1, 4294967168  ;;  %s1004_s17 = scalar_lea.sflag [#allocation17], %s994_s22 }
 0x4be   : > { %1676 = dma.done.wait (!%p1327_p11), %s1004_s17, 128  }
 0x4bf   : > { %1678 = vsyncadd (!%p1327_p11), %s1004_s17, 4294967168  ;;  %s35_s18 = sadd.s32 1, %s2256_s18   ;;  %s2259_s28 = sld [smem:[#allocation31_spill]] }
 0x4c0   : > { %p32_p10 = scmp.ge.s32.totalorder %s35_s18, 4   ;;  %s2260_s16 = sld [smem:[#allocation26_spill]] }
 0x4c1   : > { %s2261_s17 = sld [smem:[#allocation29_spill]]  ;;  %s2262_s13 = smov %s1685_s14 }
 0x4c2   : > { %s2263_s14 = smov %s1689_s15  ;;  %34 = sbr.rel (!%p32_p10) target bundleno = 19 (0x13), region = 158 }
 0x4c5   : > { %s2264_s15 = smov %s2259_s28 }
 0x4c9   :  { %1009 = vsyncpa [#allocation5], 1 }
 0x4ca   :  { %1011 = vsyncpa [#allocation5 + $0x1], 1 }
 0x4cb   :  { %1012 = vsyncpa [#allocation8], 1 }
 0x4cc   :  { %1014 = vsyncpa [#allocation8 + $0x1], 1 }
 0x4cd   :  { %1015 = vsyncpa [#allocation11], 1 }
 0x4ce   :  { %1016 = vsyncpa [#allocation14], 1 }
 0x4cf   :  { %1017 = vsyncpa [#allocation6], 1 }
 0x4d0   :  { %1019 = vsyncpa [#allocation6 + $0x1], 1 }
 0x4d1   :  { %1020 = vsyncpa [#allocation17], 1 }
 0x4d2   :  { %1022 = vsyncpa [#allocation17 + $0x1], 1 }

</bundles_post_ra>
